<compile_context>
chip_gen: v7x
topology: tpu7x:2x2x1
jax: 0.10.0
libtpu: 0.0.40
codegen_flags: <defaults>
</compile_context>

<pallas_src>
import jax
import jax.numpy as jnp
from jax.experimental import pallas as pl
from jax.experimental.pallas import tpu as pltpu


def _round_up(a: int, b: int) -> int:
    return ((a + b - 1) // b) * b


def mlp_layer_kernel(x_ref, w_ref, b_ref, gamma_ref, beta_ref, o_ref, acc_ref):
    k = pl.program_id(1)

    @pl.when(k == 0)
    def _():
        acc_ref[...] = jnp.zeros_like(acc_ref)

    # Native-dtype MXU matmul, f32 accumulation.
    acc_ref[...] += jnp.dot(
        x_ref[...], w_ref[...], preferred_element_type=jnp.float32
    )

    @pl.when(k == pl.num_programs(1) - 1)
    def _():
        # Bias must be applied before LayerNorm (it shifts mean/var per-feature).
        y = acc_ref[...] + b_ref[...].astype(jnp.float32)

        # LayerNorm over the feature (last) axis, eps = 1e-5 (torch default).
        inv_f = 1.0 / y.shape[-1]
        mean = jnp.sum(y, axis=-1, keepdims=True) * inv_f
        yc = y - mean
        var = jnp.sum(yc * yc, axis=-1, keepdims=True) * inv_f
        y_norm = yc * jax.lax.rsqrt(var + 1e-5)
        y_norm = (
            y_norm * gamma_ref[...].astype(jnp.float32)
            + beta_ref[...].astype(jnp.float32)
        )

        # SiLU
        out = y_norm * jax.nn.sigmoid(y_norm)
        o_ref[...] = out.astype(o_ref.dtype)


def mlp_layer(x, w_t, b, gamma, beta, *, tile_m=256, tile_k=512):
    """Fused Linear + LayerNorm + SiLU.

    x:     (N, in_features)
    w_t:   (in_features, out_features)   (transposed torch Linear weight)
    b:     (1, out_features)
    gamma: (1, out_features)
    beta:  (1, out_features)
    """
    N, K = x.shape
    Kw, F = w_t.shape
    assert Kw == K
    assert b.shape == (1, F) and gamma.shape == (1, F) and beta.shape == (1, F)
    # NOTE: for best store bandwidth out_features should be a multiple of 128;
    # smaller widths still work but emit masked stores.

    # --- Row (M) tiling: multiple of 8 sublanes, clamped to the problem size. ---
    tm = min(_round_up(tile_m, 8), _round_up(N, 8))
    n_pad = _round_up(N, tm)

    # --- K tiling: single full-K block if it fits, otherwise 128-aligned tiles. ---
    if K <= tile_k:
        tk = K
        k_pad = K
    else:
        tk = _round_up(tile_k, 128)
        k_pad = _round_up(K, tk)

    # Zero-padding rows / K-columns is exact: padded K contributes 0 to the
    # matmul, padded rows are sliced off before returning.
    if n_pad != N or k_pad != K:
        x = jnp.pad(x, ((0, n_pad - N), (0, k_pad - K)))
    if k_pad != K:
        w_t = jnp.pad(w_t, ((0, k_pad - K), (0, 0)))

    grid = (n_pad // tm, k_pad // tk)

    # Raise the scoped VMEM limit only when the tile footprint needs it
    # (double-buffered x / w / out tiles + f32 accumulator + params).
    xb = jnp.dtype(x.dtype).itemsize
    wb = jnp.dtype(w_t.dtype).itemsize
    est = 2 * (tm * tk * xb + tk * F * wb + tm * F * xb) + tm * F * 4 + 8 * F * 4
    vmem_limit = None
    if est > 24 * 1024 * 1024:
        vmem_limit = min(int(est * 3 // 2) + (2 << 20), 100 * 1024 * 1024)

    out = pl.pallas_call(
        mlp_layer_kernel,
        out_shape=jax.ShapeDtypeStruct((n_pad, F), x.dtype),
        grid_spec=pltpu.PrefetchScalarGridSpec(
            num_scalar_prefetch=0,
            grid=grid,
            in_specs=[
                pl.BlockSpec((tm, tk), lambda i, k: (i, k)),
                pl.BlockSpec((tk, F), lambda i, k: (k, 0)),
                pl.BlockSpec((1, F), lambda i, k: (0, 0)),
                pl.BlockSpec((1, F), lambda i, k: (0, 0)),
                pl.BlockSpec((1, F), lambda i, k: (0, 0)),
            ],
            out_specs=pl.BlockSpec((tm, F), lambda i, k: (i, 0)),
            scratch_shapes=[pltpu.VMEM((tm, F), jnp.float32)],
        ),
        compiler_params=pltpu.CompilerParams(
            dimension_semantics=("parallel", "arbitrary"),
            vmem_limit_bytes=vmem_limit,
        ),
    )(x, w_t, b, gamma, beta)

    return out[:N] if n_pad != N else out


def mlp_layer_ref(x, w_t, b, gamma, beta):
    """Pure-JAX reference (Linear -> LayerNorm -> SiLU)."""
    y = x.astype(jnp.float32) @ w_t.astype(jnp.float32) + b.astype(jnp.float32)
    mean = jnp.mean(y, axis=-1, keepdims=True)
    var = jnp.mean((y - mean) ** 2, axis=-1, keepdims=True)
    y = (y - mean) * jax.lax.rsqrt(var + 1e-5)
    y = y * gamma.astype(jnp.float32) + beta.astype(jnp.float32)
    y = y * jax.nn.sigmoid(y)
    return y.astype(x.dtype)


def init_params(key, in_features, out_features):
    """Deterministic parameter init matching nn.Linear + nn.LayerNorm shapes."""
    k_w, k_b = jax.random.split(key)
    bound = 1.0 / jnp.sqrt(in_features)
    # torch Linear weight is (out, in); store transposed (in, out) for the kernel.
    w_t = jax.random.uniform(
        k_w, (in_features, out_features), jnp.float32, -bound, bound
    )
    b = jax.random.uniform(k_b, (1, out_features), jnp.float32, -bound, bound)
    gamma = jnp.ones((1, out_features), jnp.float32)
    beta = jnp.zeros((1, out_features), jnp.float32)
    return w_t, b, gamma, beta


# TODO(synk): the norm='batchnorm' branch (nn.BatchNorm1d with running stats /
# training-mode batch statistics) is not implemented; only the default
# 'layernorm' path is fused here.

if __name__ == "__main__":
    key = jax.random.PRNGKey(0)
    k1, k2, k3, k4 = jax.random.split(key, 4)

    # Case 1: tiny shapes (exercises row padding, single K step).
    N, fin, fout = 10, 16, 32
    x = jax.random.normal(k1, (N, fin), jnp.float32)
    w_t, b, gamma, beta = init_params(k2, fin, fout)
    out = mlp_layer(x, w_t, b, gamma, beta)
    jax.block_until_ready(out)
    ref = mlp_layer_ref(x, w_t, b, gamma, beta)
    assert out.shape == ref.shape
    assert jnp.allclose(out, ref, atol=1e-5, rtol=1e-5)

    # Case 2: small but exercises K-tiling + accumulator init/finalize.
    N2, fin2, fout2 = 64, 256, 128
    x2 = jax.random.normal(k3, (N2, fin2), jnp.float32)
    w2, b2, g2, be2 = init_params(k4, fin2, fout2)
    out2 = mlp_layer(x2, w2, b2, g2, be2, tile_m=32, tile_k=128)
    jax.block_until_ready(out2)
    ref2 = mlp_layer_ref(x2, w2, b2, g2, be2)
    assert jnp.allclose(out2, ref2, atol=1e-4, rtol=1e-4)

    print("KERNEL_OK")
</pallas_src>

<mosaic_0001>
module attributes {stable_mosaic.version = 11 : i64} {
  func.func @mlp_layer_kernel(%arg0: i32, %arg1: i32, %arg2: memref<16x16xf32, #tpu.memory_space<vmem>>, %arg3: memref<16x32xf32, #tpu.memory_space<vmem>>, %arg4: memref<1x32xf32, #tpu.memory_space<vmem>>, %arg5: memref<1x32xf32, #tpu.memory_space<vmem>>, %arg6: memref<1x32xf32, #tpu.memory_space<vmem>>, %arg7: memref<16x32xf32, #tpu.memory_space<vmem>>, %arg8: memref<16x32xf32, #tpu.memory_space<vmem>>) attributes {dimension_semantics = [#tpu.dimension_semantics<parallel>, #tpu.dimension_semantics<arbitrary>], iteration_bounds = array<i64: 1, 1>, scalar_prefetch = 0 : i64, scratch_operands = 1 : i64, tpu.core_type = #tpu.core_type<tc>, window_params = [{transform_indices = @transform_0, window_bounds = array<i64: 16, 16>}, {transform_indices = @transform_1, window_bounds = array<i64: 16, 32>}, {pipeline_mode = #tpu.pipeline_mode<synchronous>, transform_indices = @transform_2, window_bounds = array<i64: 1, 32>}, {pipeline_mode = #tpu.pipeline_mode<synchronous>, transform_indices = @transform_3, window_bounds = array<i64: 1, 32>}, {pipeline_mode = #tpu.pipeline_mode<synchronous>, transform_indices = @transform_4, window_bounds = array<i64: 1, 32>}, {transform_indices = @transform_5, window_bounds = array<i64: 16, 32>}]} {
    %c0_i32 = arith.constant 0 : i32
    %0 = arith.cmpi eq, %arg1, %c0_i32 : i32
    %1 = arith.extui %0 : i1 to i32
    %c0_i32_0 = arith.constant 0 : i32
    %2 = arith.cmpi ne, %1, %c0_i32_0 : i32
    scf.if %2 {
      %cst_10 = arith.constant 0.000000e+00 : f32
      %12 = vector.broadcast %cst_10 : f32 to vector<16x32xf32>
      %c0_11 = arith.constant 0 : index
      %c0_12 = arith.constant 0 : index
      %13 = vector.load %arg8[%c0_11, %c0_12] : memref<16x32xf32, #tpu.memory_space<vmem>>, vector<16x32xf32>
      tpu.vector_store %arg8[%c0_11, %c0_12], %12 {strides = array<i32>} : memref<16x32xf32, #tpu.memory_space<vmem>>, vector<16x32xf32>,
    } else {
    }
    %c0 = arith.constant 0 : index
    %c0_1 = arith.constant 0 : index
    %3 = vector.load %arg8[%c0, %c0_1] : memref<16x32xf32, #tpu.memory_space<vmem>>, vector<16x32xf32>
    %c0_2 = arith.constant 0 : index
    %c0_3 = arith.constant 0 : index
    %4 = vector.load %arg2[%c0_2, %c0_3] : memref<16x16xf32, #tpu.memory_space<vmem>>, vector<16x16xf32>
    %c0_4 = arith.constant 0 : index
    %c0_5 = arith.constant 0 : index
    %5 = vector.load %arg3[%c0_4, %c0_5] : memref<16x32xf32, #tpu.memory_space<vmem>>, vector<16x32xf32>
    %cst = arith.constant dense<0.000000e+00> : vector<16x32xf32>
    %6 = tpu.matmul %4, %5, %cst {dimension_numbers = #tpu.dot_dimension_numbers<[1], [0], [0], [1], [0, 0, 1, 1], [], []>} : vector<16x16xf32>, vector<16x32xf32>, vector<16x32xf32> -> vector<16x32xf32>
    %7 = arith.addf %3, %6 : vector<16x32xf32>
    %c0_6 = arith.constant 0 : index
    %c0_7 = arith.constant 0 : index
    %8 = vector.load %arg8[%c0_6, %c0_7] : memref<16x32xf32, #tpu.memory_space<vmem>>, vector<16x32xf32>
    tpu.vector_store %arg8[%c0_6, %c0_7], %7 {strides = array<i32>} : memref<16x32xf32, #tpu.memory_space<vmem>>, vector<16x32xf32>,
    %c0_i32_8 = arith.constant 0 : i32
    %9 = arith.cmpi eq, %arg1, %c0_i32_8 : i32
    %10 = arith.extui %9 : i1 to i32
    %c0_i32_9 = arith.constant 0 : i32
    %11 = arith.cmpi ne, %10, %c0_i32_9 : i32
    scf.if %11 {
      %c0_10 = arith.constant 0 : index
      %c0_11 = arith.constant 0 : index
      %12 = vector.load %arg8[%c0_10, %c0_11] : memref<16x32xf32, #tpu.memory_space<vmem>>, vector<16x32xf32>
      %c0_12 = arith.constant 0 : index
      %c0_13 = arith.constant 0 : index
      %13 = vector.load %arg4[%c0_12, %c0_13] : memref<1x32xf32, #tpu.memory_space<vmem>>, vector<1x32xf32>
      %14 = vector.broadcast %13 : vector<1x32xf32> to vector<16x32xf32>
      %15 = arith.addf %12, %14 : vector<16x32xf32>
      %cst_14 = arith.constant dense<0.000000e+00> : vector<16xf32>
      %16 = vector.multi_reduction <add>, %15, %cst_14 [1] : vector<16x32xf32> to vector<16xf32>
      %17 = vector.shape_cast %16 : vector<16xf32> to vector<16x1xf32>
      %cst_15 = arith.constant 3.125000e-02 : f32
      %18 = vector.broadcast %cst_15 : f32 to vector<16x1xf32>
      %19 = arith.mulf %17, %18 : vector<16x1xf32>
      %20 = vector.broadcast %19 : vector<16x1xf32> to vector<16x32xf32>
      %21 = arith.subf %15, %20 : vector<16x32xf32>
      %22 = arith.mulf %21, %21 : vector<16x32xf32>
      %cst_16 = arith.constant dense<0.000000e+00> : vector<16xf32>
      %23 = vector.multi_reduction <add>, %22, %cst_16 [1] : vector<16x32xf32> to vector<16xf32>
      %24 = vector.shape_cast %23 : vector<16xf32> to vector<16x1xf32>
      %cst_17 = arith.constant 3.125000e-02 : f32
      %25 = vector.broadcast %cst_17 : f32 to vector<16x1xf32>
      %26 = arith.mulf %24, %25 : vector<16x1xf32>
      %cst_18 = arith.constant 9.99999974E-6 : f32
      %27 = vector.broadcast %cst_18 : f32 to vector<16x1xf32>
      %28 = arith.addf %26, %27 : vector<16x1xf32>
      %29 = math.rsqrt %28 : vector<16x1xf32>
      %30 = vector.broadcast %29 : vector<16x1xf32> to vector<16x32xf32>
      %31 = arith.mulf %21, %30 : vector<16x32xf32>
      %c0_19 = arith.constant 0 : index
      %c0_20 = arith.constant 0 : index
      %32 = vector.load %arg5[%c0_19, %c0_20] : memref<1x32xf32, #tpu.memory_space<vmem>>, vector<1x32xf32>
      %33 = vector.broadcast %32 : vector<1x32xf32> to vector<16x32xf32>
      %34 = arith.mulf %31, %33 : vector<16x32xf32>
      %c0_21 = arith.constant 0 : index
      %c0_22 = arith.constant 0 : index
      %35 = vector.load %arg6[%c0_21, %c0_22] : memref<1x32xf32, #tpu.memory_space<vmem>>, vector<1x32xf32>
      %36 = vector.broadcast %35 : vector<1x32xf32> to vector<16x32xf32>
      %37 = arith.addf %34, %36 : vector<16x32xf32>
      %38 = arith.negf %37 : vector<16x32xf32>
      %39 = math.exp %38 : vector<16x32xf32>
      %cst_23 = arith.constant 1.000000e+00 : f32
      %40 = vector.broadcast %cst_23 : f32 to vector<16x32xf32>
      %41 = arith.addf %40, %39 : vector<16x32xf32>
      %42 = arith.divf %40, %41 : vector<16x32xf32>
      %43 = arith.mulf %37, %42 : vector<16x32xf32>
      %c0_24 = arith.constant 0 : index
      %c0_25 = arith.constant 0 : index
      %44 = vector.load %arg7[%c0_24, %c0_25] : memref<16x32xf32, #tpu.memory_space<vmem>>, vector<16x32xf32>
      tpu.vector_store %arg7[%c0_24, %c0_25], %43 {strides = array<i32>} : memref<16x32xf32, #tpu.memory_space<vmem>>, vector<16x32xf32>,
    } else {
    }
    return
  }
  func.func @transform_0(%arg0: i32, %arg1: i32) -> (i32, i32) {
    %c0_i32 = arith.constant 0 : i32
    return %arg0, %arg1 : i32, i32
  }
  func.func @transform_1(%arg0: i32, %arg1: i32) -> (i32, i32) {
    %c0_i32 = arith.constant 0 : i32
    %c0_i32_0 = arith.constant 0 : i32
    return %arg1, %c0_i32 : i32, i32
  }
  func.func @transform_2(%arg0: i32, %arg1: i32) -> (i32, i32) {
    %c0_i32 = arith.constant 0 : i32
    %c0_i32_0 = arith.constant 0 : i32
    %c0_i32_1 = arith.constant 0 : i32
    return %c0_i32, %c0_i32_0 : i32, i32
  }
  func.func @transform_3(%arg0: i32, %arg1: i32) -> (i32, i32) {
    %c0_i32 = arith.constant 0 : i32
    %c0_i32_0 = arith.constant 0 : i32
    %c0_i32_1 = arith.constant 0 : i32
    return %c0_i32, %c0_i32_0 : i32, i32
  }
  func.func @transform_4(%arg0: i32, %arg1: i32) -> (i32, i32) {
    %c0_i32 = arith.constant 0 : i32
    %c0_i32_0 = arith.constant 0 : i32
    %c0_i32_1 = arith.constant 0 : i32
    return %c0_i32, %c0_i32_0 : i32, i32
  }
  func.func @transform_5(%arg0: i32, %arg1: i32) -> (i32, i32) {
    %c0_i32 = arith.constant 0 : i32
    %c0_i32_0 = arith.constant 0 : i32
    return %arg0, %c0_i32 : i32, i32
  }
}

</mosaic_0001>

<bundles_post_ra>
// kernel: tpu_custom_call.1
= control target key start
LH: loop header
LB: loop body
LE: loop exit
PB: predicated region body
PF: predicated region fallthrough
CT: control target
= control target key end

     0   :  { %10 = vsyncpa [#allocation4], 0  ;;  %s453_s0 = inlined_call_operand.hbm [shape: f32[16,16], index: 0, kind: input, shape index: {}]   ;;  %s454_s1 = inlined_call_operand.hbm [shape: f32[16,32], index: 1, kind: input, shape index: {}]   ;;  %s455_s2 = inlined_call_operand.vmem [shape: f32[1,32], index: 2, kind: input, shape index: {}]   ;;  %s456_s3 = inlined_call_operand.vmem [shape: f32[1,32], index: 3, kind: input, shape index: {}]   ;;  %s457_s4 = inlined_call_operand.vmem [shape: f32[1,32], index: 4, kind: input, shape index: {}]   ;;  %s458_s5 = inlined_call_operand.hbm [shape: f32[16,32], index: 5, kind: output, shape index: {}]  }
   0x1   :  { %11 = vsyncpa [#allocation7], 0 }
   0x2   :  { %12 = vsyncpa [#allocation5], 0  ;;  %s353_s18 = smov [#allocation3]   ;;  %s281_s22 = scalar_lea.hbm %s453_s0, 256 }
   0x3   :  { %s18_s19 = sshll.u32 %s353_s18, 4  ;;  %p282_p0 = scmp.ne.s32.totalorder %s453_s0, %s281_s22  ;;  %s19_s19 = int_to_ptr.vmem [resolvable:$true] %s18_s19 }
   0x4   :  { %p285_p1 = scmp.lt.u32.totalorder %s281_s22, %s453_s0 }
   0x6   :  { %p287_p2 = pnand %p285_p1, %p282_p0 }
   0x8   :  { %290 = shalt.err (!%p287_p2)
}
   0x9   :  { %s291_s27 = scalar_lea.vmem %s19_s19, 256  ;;  %p296_p4 = scmp.lt.s32.totalorder %s19_s19, %s19_s19 }
   0xa   :  { %p292_p3 = scmp.ne.s32.totalorder %s19_s19, %s291_s27  ;;  %p297_p5 = scmp.lt.s32.totalorder %s291_s27, %s291_s27 }
   0xc   :  { %p298_p6 = por %p297_p5, %p296_p4 }
   0xe   :  { %p299_p7 = pnand %p298_p6, %p292_p3 }
  0x10   :  { %302 = shalt.err (!%p299_p7)
}
  0x11   :  { %s354_s28 = smov 128   ;;  %s355_s29 = smov 8  }
  0x12   :  { %24 = dma.hbm_to_vmem [thread:$0]  %s453_s0, 256, %s19_s19, [#allocation4], %s354_s28, %s354_s28, %s355_s29  }
  0x13   :  { %s356_s7 = smov [#allocation6]   ;;  %s303_s11 = scalar_lea.hbm %s454_s1, 256 }
  0x14   :  { %s30_s8 = sshll.u32 %s356_s7, 4  ;;  %p304_p8 = scmp.ne.s32.totalorder %s454_s1, %s303_s11  ;;  %s31_s8 = int_to_ptr.vmem [resolvable:$true] %s30_s8 }
  0x15   :  { %p307_p9 = scmp.lt.u32.totalorder %s303_s11, %s454_s1 }
  0x17   :  { %p309_p10 = pnand %p307_p9, %p304_p8 }
  0x19   :  { %312 = shalt.err (!%p309_p10)
}
  0x1a   :  { %s313_s16 = scalar_lea.vmem %s31_s8, 256  ;;  %p318_p12 = scmp.lt.s32.totalorder %s31_s8, %s31_s8 }
  0x1b   :  { %p314_p11 = scmp.ne.s32.totalorder %s31_s8, %s313_s16  ;;  %p319_p13 = scmp.lt.s32.totalorder %s313_s16, %s313_s16 }
  0x1d   :  { %p320_p0 = por %p319_p13, %p318_p12 }
  0x1f   :  { %p321_p1 = pnand %p320_p0, %p314_p11 }
  0x21   :  { %324 = shalt.err (!%p321_p1)
}
  0x22   :  { %36 = dma.hbm_to_vmem [thread:$0]  %s454_s1, 256, %s31_s8, [#allocation7], %s354_s28, %s354_s28, %s355_s29  }
  0x23   :  { %347 = dma.done.wait [#allocation4], 256  }
  0x24   :  { %348 = vsyncadd [#allocation4], 4294967040 }
  0x25   :  { %349 = dma.done.wait [#allocation7], 256  }
  0x26   :  { %350 = vsyncadd [#allocation7], 4294967040  ;;  %vm53_vm0 = vcmask 261120   ;;  %v357_v0 = vmov 0.0   ;;  %vm62_vm1 = vcmask 130048   ;;  %v60_v1 = vld [vmem:[#allocation6] sm:$0xff] }
  0x27   :  { %55 = vst.msk [vmem:[#allocation2 + $0x8] sm:$0xff] %vm53_vm0, %v357_v0  ;;  %54 = vst.msk [vmem:[#allocation2] sm:$0xff] %vm53_vm0, %v357_v0  ;;  %v61_v2 = vld [vmem:[#allocation6 + $0x8] sm:$0xff]  ;;  %v58_v3 = vld [vmem:[#allocation3] sm:$0xff] }
  0x28   :  { %v259_v4 = vpack.c.bf16 %v61_v2, %v60_v1  ;;  %256 = vmatprep.mubr.msk.f32.mxu0 %vm62_vm1, %v58_v3  ;;  %v59_v5 = vld [vmem:[#allocation3 + $0x8] sm:$0xff]  ;;  %v243_v12 = vld [vmem:[%s455_s2] ss:$0 sm:$0xff] }
  0x29   :  { %v244_v36 = vld [vmem:[%s456_s3] ss:$0 sm:$0xff]  ;;  %s358_s3 = smov [#allocation8]  }
  0x2a   :  { %260 = vmatprep.subr.bf16.mxu0 %v259_v4  ;;  %v245_v38 = vld [vmem:[%s457_s4] ss:$0 sm:$0xff]  ;;  %s228_s4 = sshll.u32 %s358_s3, 4  ;;  %s229_s4 = int_to_ptr.vmem [resolvable:$true] %s228_s4 }
  0x2b   :  { %262 = vmatpush3.bf16.msra.mxu0 %v259_v4  ;;  %s325_s22 = scalar_lea.vmem %s229_s4, 256  ;;  %p330_p3 = scmp.lt.s32.totalorder %s229_s4, %s229_s4 }
  0x2c   :  { %p326_p2 = scmp.ne.s32.totalorder %s229_s4, %s325_s22  ;;  %p331_p4 = scmp.lt.s32.totalorder %s325_s22, %s325_s22 }
  0x2e   :  { %257 = vmatmul.mubr.msk.f32.vlgmr.msra.gmra.mrb[0].mxu0 %vm62_vm1, %v59_v5  ;;  %v57_v6 = vld [vmem:[#allocation2 + $0x8] sm:$0xff]  ;;  %v56_v7 = vld [vmem:[#allocation2] sm:$0xff]  ;;  %p332_p5 = por %p331_p4, %p330_p3 }
  0x30   :  { %p333_p6 = pnand %p332_p5, %p326_p2 }
 0x101   :  { %v258_v8 = vpop.f32.mrb[0].mxu0 }
 0x102   :  { %v145_v9 = vadd.f32 %v258_v8, %v57_v6  ;;  %v135_v10 = vpop.f32.mrb[1].mxu0 }
 0x103   :  { %v144_v11 = vadd.f32 %v135_v10, %v56_v7 }
 0x104   :  { %148 = vst.msk [vmem:[#allocation2 + $0x8] sm:$0xff] %vm53_vm0, %v145_v9 }
 0x105   :  { %147 = vst.msk [vmem:[#allocation2] sm:$0xff] %vm53_vm0, %v144_v11 }
 0x10b   :  { %v153_v14 = vld [vmem:[#allocation2 + $0x8] sm:$0xff] }
 0x10c   :  { %v152_v13 = vld [vmem:[#allocation2] sm:$0xff]  ;;  %v162_v17 = vadd.f32 %v243_v12, %v153_v14 }
 0x10d   :  { %v161_v15 = vadd.f32 %v243_v12, %v152_v13 }
 0x10e   :  { %v166_v18 = vsel %vm53_vm0, %v162_v17, 0.0 }
 0x10f   :  { %v163_v16 = vsel %vm53_vm0, %v161_v15, 0.0 }
 0x110   :  { %164 = vadd.xlane.f32.xlu0 %v163_v16 }
 0x114   :  { %167 = vadd.xlane.f32.xlu0 %v166_v18 }
 0x19d   :  { %v165_v19 = vpop.xlane.xlu0 %164 }
 0x19e   :  { %v169_v20 = vmul.f32 0.03125, %v165_v19 }
 0x1a0   :  { %v171_v21 = vsub.f32 %v161_v15, %v169_v20 }
 0x1a1   :  { %v168_v22 = vpop.xlane.xlu0 %167 }
 0x1a2   :  { %v170_v23 = vmul.f32 0.03125, %v168_v22  ;;  %v173_v24 = vmul.f32 %v171_v21, %v171_v21 }
 0x1a4   :  { %v172_v25 = vsub.f32 %v162_v17, %v170_v23  ;;  %v175_v26 = vsel %vm53_vm0, %v173_v24, 0.0 }
 0x1a5   :  { %176 = vadd.xlane.f32.xlu1 %v175_v26 }
 0x1a6   :  { %v174_v27 = vmul.f32 %v172_v25, %v172_v25 }
 0x1a8   :  { %v178_v28 = vsel %vm53_vm0, %v174_v27, 0.0 }
 0x1a9   :  { %179 = vadd.xlane.f32.xlu1 %v178_v28 }
 0x232   :  { %v177_v29 = vpop.xlane.xlu1 %176 }
 0x233   :  { %v181_v30 = vmul.f32 0.03125, %v177_v29 }
 0x235   :  { %v183_v31 = vadd.f32 1e-05, %v181_v30 }
 0x236   :  { %v180_v32 = vpop.xlane.xlu1 %179 }
 0x237   :  { %269 = vrsqrt.f32 %v183_v31  ;;  %v182_v33 = vmul.f32 0.03125, %v180_v32 }
 0x239   :  { %v184_v34 = vadd.f32 1e-05, %v182_v33 }
 0x23b   :  { %271 = vrsqrt.f32 %v184_v34 }
 0x241   :  { %v270_v35 = vpop.eup %269 }
 0x242   :  { %v187_v37 = vmul.f32 %v270_v35, %v171_v21 }
 0x244   :  { %v196_v39 = vmul.f32 %v244_v36, %v187_v37 }
 0x245   :  { %v272_v40 = vpop.eup %271 }
 0x246   :  { %v188_v41 = vmul.f32 %v272_v40, %v172_v25  ;;  %v205_v42 = vadd.f32 %v245_v38, %v196_v39 }
 0x248   :  { %v197_v43 = vmul.f32 %v244_v36, %v188_v41  ;;  %v246_v44 = vmul.f32 -1.442695, %v205_v42 }
 0x24a   :  { %v206_v45 = vadd.f32 %v245_v38, %v197_v43  ;;  %273 = vpow2.f32 %v246_v44 }
 0x24c   :  { %v247_v46 = vmul.f32 -1.442695, %v206_v45 }
 0x24e   :  { %275 = vpow2.f32 %v247_v46 }
 0x254   :  { %v274_v47 = vpop.eup %273 }
 0x255   :  { %v213_v48 = vadd.f32 1.0, %v274_v47 }
 0x257   :  { %277 = vrcp.f32 %v213_v48 }
 0x258   :  { %v276_v49 = vpop.eup %275 }
 0x259   :  { %v214_v50 = vadd.f32 1.0, %v276_v49 }
 0x25b   :  { %279 = vrcp.f32 %v214_v50 }
 0x261   :  { %v278_v51 = vpop.eup %277 }
 0x262   :  { %v219_v52 = vmul.f32 %v278_v51, %v205_v42 }
 0x264   :  { %221 = vst.msk [vmem:[#allocation8] sm:$0xff] %vm53_vm0, %v219_v52 }
 0x265   :  { %v280_v53 = vpop.eup %279 }
 0x266   :  { %v220_v54 = vmul.f32 %v280_v53, %v206_v45 }
 0x268   :  { %222 = vst.msk [vmem:[#allocation8 + $0x8] sm:$0xff] %vm53_vm0, %v220_v54 }
 0x269   :  { %336 = shalt.err (!%p333_p6)
}
 0x26a   :  { %s337_s25 = scalar_lea.hbm %s458_s5, 256 }
 0x26b   :  { %p338_p7 = scmp.ne.s32.totalorder %s458_s5, %s337_s25  ;;  %p341_p8 = scmp.lt.u32.totalorder %s337_s25, %s458_s5 }
 0x26d   :  { %p343_p9 = pnand %p341_p8, %p338_p7 }
 0x26f   :  { %346 = shalt.err (!%p343_p9)
}
 0x270   :  { %234 = dma.vmem_to_hbm [thread:$0]  %s229_s4, 256, %s458_s5, [#allocation5], %s354_s28, %s354_s28, %s355_s29  }
 0x271   :  { %351 = dma.done.wait [#allocation5], 256  }
 0x272   :  { %352 = vsyncadd [#allocation5], 4294967040 }
 0x273   :  { %238 = vsyncpa [#allocation4], 1 }
 0x274   :  { %239 = vsyncpa [#allocation7], 1 }
 0x275   :  { %240 = vsyncpa [#allocation5], 1 }

</bundles_post_ra>
